<compile_context>
chip_gen: v7x
topology: tpu7x:2x2x1
jax: 0.10.0
libtpu: 0.0.40
codegen_flags: <defaults>
</compile_context>

<pallas_src>
import functools

import jax
import jax.numpy as jnp
from jax.experimental import pallas as pl
from jax.experimental.pallas import tpu as pltpu


def _round_up(x: int, m: int) -> int:
    return ((x + m - 1) // m) * m


def _vmem_capacity_bytes() -> int:
    """Physical VMEM per TensorCore (128 MiB on v5e/v6e, 64 MiB on v7x)."""
    try:
        return int(pltpu.get_tpu_info().vmem_capacity_bytes)
    except Exception:
        return 64 * 1024 * 1024  # conservative fallback


# ---------------------------------------------------------------------------
# Path A: embedding table resident in VMEM -> gather = in-VMEM dynamic reads.
# ---------------------------------------------------------------------------
def _embed_vmem_kernel(tok_ref, emb_ref, pos_ref, out_ref, *, t_pad, tile_t):
    # tok_ref : SMEM (B * t_pad,) int32 token ids (scalar prefetch)
    # emb_ref : VMEM (n_vocab, n_embed) resident embedding table
    # pos_ref : VMEM (tile_t, n_embed) position-embedding tile
    # out_ref : VMEM (tile_t, n_embed) output tile (batch dim squeezed)
    t = pl.program_id(0)          # token-tile index
    b = pl.program_id(1)          # batch index
    base = b * t_pad + t * tile_t

    # Fully-unrolled (tile_t is static) gather: one dynamic-sublane VMEM read
    # per row, written straight into the output tile.  No DMA descriptors.
    for i in range(tile_t):
        tok_id = tok_ref[base + i]
        out_ref[pl.ds(i, 1), :] = emb_ref[pl.ds(tok_id, 1), :]

    # One dense, lane-full (tile_t, E) add + store.
    out_ref[...] = out_ref[...] + pos_ref[...]


# ---------------------------------------------------------------------------
# Path B: table stays in HBM -> per-row DMA gather, "issue all, wait lazily".
# ---------------------------------------------------------------------------
def _embed_hbm_kernel(tok_ref, emb_hbm, pos_ref, out_ref, sem, *, t_pad, tile_t):
    # tok_ref : SMEM (B * t_pad,) int32 token ids (scalar prefetch)
    # emb_hbm : HBM  (n_vocab, n_embed) embedding table (pl.ANY, raw ref)
    # pos_ref : VMEM (tile_t, n_embed) position-embedding tile
    # out_ref : VMEM (tile_t, n_embed) output tile (batch dim squeezed)
    # sem     : DMA semaphores, one per gathered row (ring == tile_t)
    t = pl.program_id(0)
    b = pl.program_id(1)
    base = b * t_pad + t * tile_t

    def row_copy(i):
        tok_id = tok_ref[base + i]
        return pltpu.make_async_copy(
            emb_hbm.at[pl.ds(tok_id, 1), :],
            out_ref.at[pl.ds(i, 1), :],    # gather straight into the output tile
            sem.at[i],
        )

    # Issue every row gather up front (fully unrolled, one semaphore per row)
    # so the DMA queue stays full and no wait sits on the issue critical path.
    for i in range(tile_t):
        row_copy(i).start()

    # Wait for all rows (identical descriptors: same src / dst / semaphore).
    for i in range(tile_t):
        row_copy(i).wait()

    # One dense, lane-full (tile_t, E) add + store.
    out_ref[...] = out_ref[...] + pos_ref[...]


def clip_embedding(tokens, token_emb, pos_emb, *, max_tile_t=128,
                   force_hbm_gather=False):
    """tokens: (B, T) int; token_emb: (V, E); pos_emb: (T, E) -> (B, T, E)."""
    batch, n_tokens = tokens.shape
    n_vocab, n_embed = token_emb.shape
    assert pos_emb.shape == (n_tokens, n_embed)

    dtype = token_emb.dtype
    itemsize = jnp.dtype(dtype).itemsize
    pos_emb = pos_emb.astype(dtype)

    # Token-tile size.  Short sequences (<= max_tile_t) use one full-extent
    # tile -> no padding, no output slice (review: avoid the pad/slice copies).
    if n_tokens <= max_tile_t:
        tile_t = n_tokens
    else:
        tile_t = _round_up(max_tile_t, 8)
    t_pad = _round_up(n_tokens, tile_t)
    num_tiles = t_pad // tile_t

    # Clamp ids defensively (matches jnp gather semantics; avoids OOB DMAs).
    tokens = jnp.clip(tokens.astype(jnp.int32), 0, n_vocab - 1)
    if t_pad != n_tokens:
        # TODO(synk): ragged tail is padded (ids 0) and sliced off below; a
        # masked tail store would avoid the extra (B, t_pad, E) HBM round trip.
        tokens = jnp.pad(tokens, ((0, 0), (0, t_pad - n_tokens)))
        pos_emb = jnp.pad(pos_emb, ((0, t_pad - n_tokens), (0, 0)))
    tokens_flat = tokens.reshape(-1)   # 1-D SMEM layout (no 2-D SMEM padding)

    tile_bytes = tile_t * n_embed * itemsize
    table_bytes = n_vocab * n_embed * itemsize
    capacity = _vmem_capacity_bytes()
    # Resident-table path: table (double-buffered by the pipeline) plus the
    # pos/out tiles must fit comfortably in VMEM.
    vmem_need_resident = 2 * table_bytes + 4 * tile_bytes + (8 << 20)
    use_vmem_table = (not force_hbm_gather) and vmem_need_resident <= (capacity * 3) // 4
    # TODO(synk): for real CLIP (49408x768) store the table in bf16 and
    # single-buffer it (pipeline_mode=pl.Buffered(1)) so it stays resident on
    # v5e/v6e's 128 MiB VMEM; on v7x (64 MiB) the HBM-gather path is used.

    if use_vmem_table:
        kernel = functools.partial(_embed_vmem_kernel, t_pad=t_pad, tile_t=tile_t)
        # Full-array block, constant index_map -> fetched once, kept resident.
        emb_spec = pl.BlockSpec((n_vocab, n_embed), lambda t, b, tok: (0, 0))
        scratch_shapes = []
        vmem_limit = int(min(capacity, vmem_need_resident + (8 << 20)))
    else:
        kernel = functools.partial(_embed_hbm_kernel, t_pad=t_pad, tile_t=tile_t)
        emb_spec = pl.BlockSpec(memory_space=pl.ANY)   # raw HBM ref, manual DMA
        scratch_shapes = [pltpu.SemaphoreType.DMA((tile_t,))]
        vmem_limit = int(min(capacity, max(32 << 20, 8 * tile_bytes + (8 << 20))))

    grid_spec = pltpu.PrefetchScalarGridSpec(
        num_scalar_prefetch=1,                 # token ids land in SMEM
        grid=(num_tiles, batch),
        in_specs=[
            emb_spec,
            # Position embeddings: one (tile_t, E) block per token tile,
            # invariant across the (inner) batch axis.
            pl.BlockSpec((tile_t, n_embed), lambda t, b, tok: (t, 0)),
        ],
        out_specs=pl.BlockSpec((None, tile_t, n_embed), lambda t, b, tok: (b, t, 0)),
        scratch_shapes=scratch_shapes,
    )

    out = pl.pallas_call(
        kernel,
        out_shape=jax.ShapeDtypeStruct((batch, t_pad, n_embed), dtype),
        grid_spec=grid_spec,
        compiler_params=pltpu.CompilerParams(
            # Both grid axes are independent -> shardable across v7x's 2 TCs.
            dimension_semantics=("parallel", "parallel"),
            vmem_limit_bytes=vmem_limit,
        ),
    )(tokens_flat, token_emb, pos_emb)

    if t_pad != n_tokens:
        out = out[:, :n_tokens, :]
    return out


if __name__ == "__main__":
    # Small shapes consistent with the module's forward (E lane-aligned).
    n_vocab, n_embed, n_tokens, batch = 512, 128, 16, 2

    key = jax.random.PRNGKey(0)
    k_tok, k_emb, k_pos = jax.random.split(key, 3)

    tokens = jax.random.randint(k_tok, (batch, n_tokens), 0, n_vocab, dtype=jnp.int32)
    # nn.Embedding weight ~ N(0,1); the module inits position_embeddings to
    # zeros, but small random values actually exercise the add.
    token_emb = jax.random.normal(k_emb, (n_vocab, n_embed), dtype=jnp.float32)
    pos_emb = 0.01 * jax.random.normal(k_pos, (n_tokens, n_embed), dtype=jnp.float32)

    # Pure-JAX reference: x = token_embeddings(tokens); x += position_embeddings
    ref = token_emb[tokens] + pos_emb[None, :, :]

    # Primary path: VMEM-resident table, in-VMEM gather.
    out = jax.block_until_ready(clip_embedding(tokens, token_emb, pos_emb))
    assert out.shape == (batch, n_tokens, n_embed)
    assert jnp.allclose(out, ref, atol=1e-6), "VMEM-table path mismatch vs reference"

    # Fallback path (used when the table exceeds the VMEM budget, e.g. f32
    # CLIP vocab or v7x's 64 MiB VMEM): HBM table + per-row DMA gather.
    out_hbm = jax.block_until_ready(
        clip_embedding(tokens, token_emb, pos_emb, force_hbm_gather=True))
    assert jnp.allclose(out_hbm, ref, atol=1e-6), "HBM-gather path mismatch vs reference"

    print("KERNEL_OK")
</pallas_src>

<mosaic_0001>
module attributes {stable_mosaic.version = 11 : i64} {
  func.func @_embed_vmem_kernel(%arg0: i32, %arg1: i32, %arg2: memref<32xi32, #tpu.memory_space<smem>>, %arg3: memref<512x128xf32, #tpu.memory_space<vmem>>, %arg4: memref<16x128xf32, #tpu.memory_space<vmem>>, %arg5: memref<1x16x128xf32, #tpu.memory_space<vmem>>) attributes {dimension_semantics = [#tpu.dimension_semantics<parallel>, #tpu.dimension_semantics<parallel>], iteration_bounds = array<i64: 1, 2>, scalar_prefetch = 1 : i64, scratch_operands = 0 : i64, tpu.core_type = #tpu.core_type<tc>, window_params = [{pipeline_mode = #tpu.pipeline_mode<synchronous>, transform_indices = @transform_0, window_bounds = array<i64: 512, 128>}, {transform_indices = @transform_1, window_bounds = array<i64: 16, 128>}, {transform_indices = @transform_2, window_bounds = array<i64: 1, 16, 128>}]} {
    %c16_i32 = arith.constant 16 : i32
    %0 = arith.muli %arg1, %c16_i32 : i32
    %c16_i32_0 = arith.constant 16 : i32
    %1 = arith.muli %arg0, %c16_i32_0 : i32
    %2 = arith.addi %0, %1 : i32
    %c0_i32 = arith.constant 0 : i32
    %3 = arith.addi %2, %c0_i32 : i32
    %4 = arith.index_cast %3 : i32 to index
    %5 = memref.load %arg2[%4] : memref<32xi32, #tpu.memory_space<smem>>
    %6 = arith.index_cast %5 : i32 to index
    %c0 = arith.constant 0 : index
    %7 = vector.load %arg3[%6, %c0] : memref<512x128xf32, #tpu.memory_space<vmem>>, vector<1x128xf32>
    %c0_1 = arith.constant 0 : index
    %c0_2 = arith.constant 0 : index
    %c0_3 = arith.constant 0 : index
    %8 = vector.load %arg5[%c0_1, %c0_2, %c0_3] : memref<1x16x128xf32, #tpu.memory_space<vmem>>, vector<1x1x128xf32>
    %9 = vector.shape_cast %8 : vector<1x1x128xf32> to vector<1x128xf32>
    %10 = vector.shape_cast %7 : vector<1x128xf32> to vector<1x1x128xf32>
    tpu.vector_store %arg5[%c0_1, %c0_2, %c0_3], %10 {strides = array<i32>} : memref<1x16x128xf32, #tpu.memory_space<vmem>>, vector<1x1x128xf32>,
    %c1_i32 = arith.constant 1 : i32
    %11 = arith.addi %2, %c1_i32 : i32
    %12 = arith.index_cast %11 : i32 to index
    %13 = memref.load %arg2[%12] : memref<32xi32, #tpu.memory_space<smem>>
    %14 = arith.index_cast %13 : i32 to index
    %c0_4 = arith.constant 0 : index
    %15 = vector.load %arg3[%14, %c0_4] : memref<512x128xf32, #tpu.memory_space<vmem>>, vector<1x128xf32>
    %c0_5 = arith.constant 0 : index
    %c1 = arith.constant 1 : index
    %c0_6 = arith.constant 0 : index
    %16 = vector.load %arg5[%c0_5, %c1, %c0_6] : memref<1x16x128xf32, #tpu.memory_space<vmem>>, vector<1x1x128xf32>
    %17 = vector.shape_cast %16 : vector<1x1x128xf32> to vector<1x128xf32>
    %18 = vector.shape_cast %15 : vector<1x128xf32> to vector<1x1x128xf32>
    tpu.vector_store %arg5[%c0_5, %c1, %c0_6], %18 {strides = array<i32>} : memref<1x16x128xf32, #tpu.memory_space<vmem>>, vector<1x1x128xf32>,
    %c2_i32 = arith.constant 2 : i32
    %19 = arith.addi %2, %c2_i32 : i32
    %20 = arith.index_cast %19 : i32 to index
    %21 = memref.load %arg2[%20] : memref<32xi32, #tpu.memory_space<smem>>
    %22 = arith.index_cast %21 : i32 to index
    %c0_7 = arith.constant 0 : index
    %23 = vector.load %arg3[%22, %c0_7] : memref<512x128xf32, #tpu.memory_space<vmem>>, vector<1x128xf32>
    %c0_8 = arith.constant 0 : index
    %c2 = arith.constant 2 : index
    %c0_9 = arith.constant 0 : index
    %24 = vector.load %arg5[%c0_8, %c2, %c0_9] : memref<1x16x128xf32, #tpu.memory_space<vmem>>, vector<1x1x128xf32>
    %25 = vector.shape_cast %24 : vector<1x1x128xf32> to vector<1x128xf32>
    %26 = vector.shape_cast %23 : vector<1x128xf32> to vector<1x1x128xf32>
    tpu.vector_store %arg5[%c0_8, %c2, %c0_9], %26 {strides = array<i32>} : memref<1x16x128xf32, #tpu.memory_space<vmem>>, vector<1x1x128xf32>,
    %c3_i32 = arith.constant 3 : i32
    %27 = arith.addi %2, %c3_i32 : i32
    %28 = arith.index_cast %27 : i32 to index
    %29 = memref.load %arg2[%28] : memref<32xi32, #tpu.memory_space<smem>>
    %30 = arith.index_cast %29 : i32 to index
    %c0_10 = arith.constant 0 : index
    %31 = vector.load %arg3[%30, %c0_10] : memref<512x128xf32, #tpu.memory_space<vmem>>, vector<1x128xf32>
    %c0_11 = arith.constant 0 : index
    %c3 = arith.constant 3 : index
    %c0_12 = arith.constant 0 : index
    %32 = vector.load %arg5[%c0_11, %c3, %c0_12] : memref<1x16x128xf32, #tpu.memory_space<vmem>>, vector<1x1x128xf32>
    %33 = vector.shape_cast %32 : vector<1x1x128xf32> to vector<1x128xf32>
    %34 = vector.shape_cast %31 : vector<1x128xf32> to vector<1x1x128xf32>
    tpu.vector_store %arg5[%c0_11, %c3, %c0_12], %34 {strides = array<i32>} : memref<1x16x128xf32, #tpu.memory_space<vmem>>, vector<1x1x128xf32>,
    %c4_i32 = arith.constant 4 : i32
    %35 = arith.addi %2, %c4_i32 : i32
    %36 = arith.index_cast %35 : i32 to index
    %37 = memref.load %arg2[%36] : memref<32xi32, #tpu.memory_space<smem>>
    %38 = arith.index_cast %37 : i32 to index
    %c0_13 = arith.constant 0 : index
    %39 = vector.load %arg3[%38, %c0_13] : memref<512x128xf32, #tpu.memory_space<vmem>>, vector<1x128xf32>
    %c0_14 = arith.constant 0 : index
    %c4 = arith.constant 4 : index
    %c0_15 = arith.constant 0 : index
    %40 = vector.load %arg5[%c0_14, %c4, %c0_15] : memref<1x16x128xf32, #tpu.memory_space<vmem>>, vector<1x1x128xf32>
    %41 = vector.shape_cast %40 : vector<1x1x128xf32> to vector<1x128xf32>
    %42 = vector.shape_cast %39 : vector<1x128xf32> to vector<1x1x128xf32>
    tpu.vector_store %arg5[%c0_14, %c4, %c0_15], %42 {strides = array<i32>} : memref<1x16x128xf32, #tpu.memory_space<vmem>>, vector<1x1x128xf32>,
    %c5_i32 = arith.constant 5 : i32
    %43 = arith.addi %2, %c5_i32 : i32
    %44 = arith.index_cast %43 : i32 to index
    %45 = memref.load %arg2[%44] : memref<32xi32, #tpu.memory_space<smem>>
    %46 = arith.index_cast %45 : i32 to index
    %c0_16 = arith.constant 0 : index
    %47 = vector.load %arg3[%46, %c0_16] : memref<512x128xf32, #tpu.memory_space<vmem>>, vector<1x128xf32>
    %c0_17 = arith.constant 0 : index
    %c5 = arith.constant 5 : index
    %c0_18 = arith.constant 0 : index
    %48 = vector.load %arg5[%c0_17, %c5, %c0_18] : memref<1x16x128xf32, #tpu.memory_space<vmem>>, vector<1x1x128xf32>
    %49 = vector.shape_cast %48 : vector<1x1x128xf32> to vector<1x128xf32>
    %50 = vector.shape_cast %47 : vector<1x128xf32> to vector<1x1x128xf32>
    tpu.vector_store %arg5[%c0_17, %c5, %c0_18], %50 {strides = array<i32>} : memref<1x16x128xf32, #tpu.memory_space<vmem>>, vector<1x1x128xf32>,
    %c6_i32 = arith.constant 6 : i32
    %51 = arith.addi %2, %c6_i32 : i32
    %52 = arith.index_cast %51 : i32 to index
    %53 = memref.load %arg2[%52] : memref<32xi32, #tpu.memory_space<smem>>
    %54 = arith.index_cast %53 : i32 to index
    %c0_19 = arith.constant 0 : index
    %55 = vector.load %arg3[%54, %c0_19] : memref<512x128xf32, #tpu.memory_space<vmem>>, vector<1x128xf32>
    %c0_20 = arith.constant 0 : index
    %c6 = arith.constant 6 : index
    %c0_21 = arith.constant 0 : index
    %56 = vector.load %arg5[%c0_20, %c6, %c0_21] : memref<1x16x128xf32, #tpu.memory_space<vmem>>, vector<1x1x128xf32>
    %57 = vector.shape_cast %56 : vector<1x1x128xf32> to vector<1x128xf32>
    %58 = vector.shape_cast %55 : vector<1x128xf32> to vector<1x1x128xf32>
    tpu.vector_store %arg5[%c0_20, %c6, %c0_21], %58 {strides = array<i32>} : memref<1x16x128xf32, #tpu.memory_space<vmem>>, vector<1x1x128xf32>,
    %c7_i32 = arith.constant 7 : i32
    %59 = arith.addi %2, %c7_i32 : i32
    %60 = arith.index_cast %59 : i32 to index
    %61 = memref.load %arg2[%60] : memref<32xi32, #tpu.memory_space<smem>>
    %62 = arith.index_cast %61 : i32 to index
    %c0_22 = arith.constant 0 : index
    %63 = vector.load %arg3[%62, %c0_22] : memref<512x128xf32, #tpu.memory_space<vmem>>, vector<1x128xf32>
    %c0_23 = arith.constant 0 : index
    %c7 = arith.constant 7 : index
    %c0_24 = arith.constant 0 : index
    %64 = vector.load %arg5[%c0_23, %c7, %c0_24] : memref<1x16x128xf32, #tpu.memory_space<vmem>>, vector<1x1x128xf32>
    %65 = vector.shape_cast %64 : vector<1x1x128xf32> to vector<1x128xf32>
    %66 = vector.shape_cast %63 : vector<1x128xf32> to vector<1x1x128xf32>
    tpu.vector_store %arg5[%c0_23, %c7, %c0_24], %66 {strides = array<i32>} : memref<1x16x128xf32, #tpu.memory_space<vmem>>, vector<1x1x128xf32>,
    %c8_i32 = arith.constant 8 : i32
    %67 = arith.addi %2, %c8_i32 : i32
    %68 = arith.index_cast %67 : i32 to index
    %69 = memref.load %arg2[%68] : memref<32xi32, #tpu.memory_space<smem>>
    %70 = arith.index_cast %69 : i32 to index
    %c0_25 = arith.constant 0 : index
    %71 = vector.load %arg3[%70, %c0_25] : memref<512x128xf32, #tpu.memory_space<vmem>>, vector<1x128xf32>
    %c0_26 = arith.constant 0 : index
    %c8 = arith.constant 8 : index
    %c0_27 = arith.constant 0 : index
    %72 = vector.load %arg5[%c0_26, %c8, %c0_27] : memref<1x16x128xf32, #tpu.memory_space<vmem>>, vector<1x1x128xf32>
    %73 = vector.shape_cast %72 : vector<1x1x128xf32> to vector<1x128xf32>
    %74 = vector.shape_cast %71 : vector<1x128xf32> to vector<1x1x128xf32>
    tpu.vector_store %arg5[%c0_26, %c8, %c0_27], %74 {strides = array<i32>} : memref<1x16x128xf32, #tpu.memory_space<vmem>>, vector<1x1x128xf32>,
    %c9_i32 = arith.constant 9 : i32
    %75 = arith.addi %2, %c9_i32 : i32
    %76 = arith.index_cast %75 : i32 to index
    %77 = memref.load %arg2[%76] : memref<32xi32, #tpu.memory_space<smem>>
    %78 = arith.index_cast %77 : i32 to index
    %c0_28 = arith.constant 0 : index
    %79 = vector.load %arg3[%78, %c0_28] : memref<512x128xf32, #tpu.memory_space<vmem>>, vector<1x128xf32>
    %c0_29 = arith.constant 0 : index
    %c9 = arith.constant 9 : index
    %c0_30 = arith.constant 0 : index
    %80 = vector.load %arg5[%c0_29, %c9, %c0_30] : memref<1x16x128xf32, #tpu.memory_space<vmem>>, vector<1x1x128xf32>
    %81 = vector.shape_cast %80 : vector<1x1x128xf32> to vector<1x128xf32>
    %82 = vector.shape_cast %79 : vector<1x128xf32> to vector<1x1x128xf32>
    tpu.vector_store %arg5[%c0_29, %c9, %c0_30], %82 {strides = array<i32>} : memref<1x16x128xf32, #tpu.memory_space<vmem>>, vector<1x1x128xf32>,
    %c10_i32 = arith.constant 10 : i32
    %83 = arith.addi %2, %c10_i32 : i32
    %84 = arith.index_cast %83 : i32 to index
    %85 = memref.load %arg2[%84] : memref<32xi32, #tpu.memory_space<smem>>
    %86 = arith.index_cast %85 : i32 to index
    %c0_31 = arith.constant 0 : index
    %87 = vector.load %arg3[%86, %c0_31] : memref<512x128xf32, #tpu.memory_space<vmem>>, vector<1x128xf32>
    %c0_32 = arith.constant 0 : index
    %c10 = arith.constant 10 : index
    %c0_33 = arith.constant 0 : index
    %88 = vector.load %arg5[%c0_32, %c10, %c0_33] : memref<1x16x128xf32, #tpu.memory_space<vmem>>, vector<1x1x128xf32>
    %89 = vector.shape_cast %88 : vector<1x1x128xf32> to vector<1x128xf32>
    %90 = vector.shape_cast %87 : vector<1x128xf32> to vector<1x1x128xf32>
    tpu.vector_store %arg5[%c0_32, %c10, %c0_33], %90 {strides = array<i32>} : memref<1x16x128xf32, #tpu.memory_space<vmem>>, vector<1x1x128xf32>,
    %c11_i32 = arith.constant 11 : i32
    %91 = arith.addi %2, %c11_i32 : i32
    %92 = arith.index_cast %91 : i32 to index
    %93 = memref.load %arg2[%92] : memref<32xi32, #tpu.memory_space<smem>>
    %94 = arith.index_cast %93 : i32 to index
    %c0_34 = arith.constant 0 : index
    %95 = vector.load %arg3[%94, %c0_34] : memref<512x128xf32, #tpu.memory_space<vmem>>, vector<1x128xf32>
    %c0_35 = arith.constant 0 : index
    %c11 = arith.constant 11 : index
    %c0_36 = arith.constant 0 : index
    %96 = vector.load %arg5[%c0_35, %c11, %c0_36] : memref<1x16x128xf32, #tpu.memory_space<vmem>>, vector<1x1x128xf32>
    %97 = vector.shape_cast %96 : vector<1x1x128xf32> to vector<1x128xf32>
    %98 = vector.shape_cast %95 : vector<1x128xf32> to vector<1x1x128xf32>
    tpu.vector_store %arg5[%c0_35, %c11, %c0_36], %98 {strides = array<i32>} : memref<1x16x128xf32, #tpu.memory_space<vmem>>, vector<1x1x128xf32>,
    %c12_i32 = arith.constant 12 : i32
    %99 = arith.addi %2, %c12_i32 : i32
    %100 = arith.index_cast %99 : i32 to index
    %101 = memref.load %arg2[%100] : memref<32xi32, #tpu.memory_space<smem>>
    %102 = arith.index_cast %101 : i32 to index
    %c0_37 = arith.constant 0 : index
    %103 = vector.load %arg3[%102, %c0_37] : memref<512x128xf32, #tpu.memory_space<vmem>>, vector<1x128xf32>
    %c0_38 = arith.constant 0 : index
    %c12 = arith.constant 12 : index
    %c0_39 = arith.constant 0 : index
    %104 = vector.load %arg5[%c0_38, %c12, %c0_39] : memref<1x16x128xf32, #tpu.memory_space<vmem>>, vector<1x1x128xf32>
    %105 = vector.shape_cast %104 : vector<1x1x128xf32> to vector<1x128xf32>
    %106 = vector.shape_cast %103 : vector<1x128xf32> to vector<1x1x128xf32>
    tpu.vector_store %arg5[%c0_38, %c12, %c0_39], %106 {strides = array<i32>} : memref<1x16x128xf32, #tpu.memory_space<vmem>>, vector<1x1x128xf32>,
    %c13_i32 = arith.constant 13 : i32
    %107 = arith.addi %2, %c13_i32 : i32
    %108 = arith.index_cast %107 : i32 to index
    %109 = memref.load %arg2[%108] : memref<32xi32, #tpu.memory_space<smem>>
    %110 = arith.index_cast %109 : i32 to index
    %c0_40 = arith.constant 0 : index
    %111 = vector.load %arg3[%110, %c0_40] : memref<512x128xf32, #tpu.memory_space<vmem>>, vector<1x128xf32>
    %c0_41 = arith.constant 0 : index
    %c13 = arith.constant 13 : index
    %c0_42 = arith.constant 0 : index
    %112 = vector.load %arg5[%c0_41, %c13, %c0_42] : memref<1x16x128xf32, #tpu.memory_space<vmem>>, vector<1x1x128xf32>
    %113 = vector.shape_cast %112 : vector<1x1x128xf32> to vector<1x128xf32>
    %114 = vector.shape_cast %111 : vector<1x128xf32> to vector<1x1x128xf32>
    tpu.vector_store %arg5[%c0_41, %c13, %c0_42], %114 {strides = array<i32>} : memref<1x16x128xf32, #tpu.memory_space<vmem>>, vector<1x1x128xf32>,
    %c14_i32 = arith.constant 14 : i32
    %115 = arith.addi %2, %c14_i32 : i32
    %116 = arith.index_cast %115 : i32 to index
    %117 = memref.load %arg2[%116] : memref<32xi32, #tpu.memory_space<smem>>
    %118 = arith.index_cast %117 : i32 to index
    %c0_43 = arith.constant 0 : index
    %119 = vector.load %arg3[%118, %c0_43] : memref<512x128xf32, #tpu.memory_space<vmem>>, vector<1x128xf32>
    %c0_44 = arith.constant 0 : index
    %c14 = arith.constant 14 : index
    %c0_45 = arith.constant 0 : index
    %120 = vector.load %arg5[%c0_44, %c14, %c0_45] : memref<1x16x128xf32, #tpu.memory_space<vmem>>, vector<1x1x128xf32>
    %121 = vector.shape_cast %120 : vector<1x1x128xf32> to vector<1x128xf32>
    %122 = vector.shape_cast %119 : vector<1x128xf32> to vector<1x1x128xf32>
    tpu.vector_store %arg5[%c0_44, %c14, %c0_45], %122 {strides = array<i32>} : memref<1x16x128xf32, #tpu.memory_space<vmem>>, vector<1x1x128xf32>,
    %c15_i32 = arith.constant 15 : i32
    %123 = arith.addi %2, %c15_i32 : i32
    %124 = arith.index_cast %123 : i32 to index
    %125 = memref.load %arg2[%124] : memref<32xi32, #tpu.memory_space<smem>>
    %126 = arith.index_cast %125 : i32 to index
    %c0_46 = arith.constant 0 : index
    %127 = vector.load %arg3[%126, %c0_46] : memref<512x128xf32, #tpu.memory_space<vmem>>, vector<1x128xf32>
    %c0_47 = arith.constant 0 : index
    %c15 = arith.constant 15 : index
    %c0_48 = arith.constant 0 : index
    %128 = vector.load %arg5[%c0_47, %c15, %c0_48] : memref<1x16x128xf32, #tpu.memory_space<vmem>>, vector<1x1x128xf32>
    %129 = vector.shape_cast %128 : vector<1x1x128xf32> to vector<1x128xf32>
    %130 = vector.shape_cast %127 : vector<1x128xf32> to vector<1x1x128xf32>
    tpu.vector_store %arg5[%c0_47, %c15, %c0_48], %130 {strides = array<i32>} : memref<1x16x128xf32, #tpu.memory_space<vmem>>, vector<1x1x128xf32>,
    %c0_49 = arith.constant 0 : index
    %c0_50 = arith.constant 0 : index
    %c0_51 = arith.constant 0 : index
    %131 = vector.load %arg5[%c0_49, %c0_50, %c0_51] : memref<1x16x128xf32, #tpu.memory_space<vmem>>, vector<1x16x128xf32>
    %132 = vector.shape_cast %131 : vector<1x16x128xf32> to vector<16x128xf32>
    %c0_52 = arith.constant 0 : index
    %c0_53 = arith.constant 0 : index
    %133 = vector.load %arg4[%c0_52, %c0_53] : memref<16x128xf32, #tpu.memory_space<vmem>>, vector<16x128xf32>
    %134 = arith.addf %132, %133 : vector<16x128xf32>
    %c0_54 = arith.constant 0 : index
    %c0_55 = arith.constant 0 : index
    %c0_56 = arith.constant 0 : index
    %135 = vector.load %arg5[%c0_54, %c0_55, %c0_56] : memref<1x16x128xf32, #tpu.memory_space<vmem>>, vector<1x16x128xf32>
    %136 = vector.shape_cast %135 : vector<1x16x128xf32> to vector<16x128xf32>
    %137 = vector.shape_cast %134 : vector<16x128xf32> to vector<1x16x128xf32>
    tpu.vector_store %arg5[%c0_54, %c0_55, %c0_56], %137 {strides = array<i32>} : memref<1x16x128xf32, #tpu.memory_space<vmem>>, vector<1x16x128xf32>,
    return
  }
  func.func @transform_0(%arg0: i32, %arg1: i32, %arg2: memref<32xi32, #tpu.memory_space<smem>>) -> (i32, i32) {
    %c0_i32 = arith.constant 0 : i32
    %c0_i32_0 = arith.constant 0 : i32
    %c0_i32_1 = arith.constant 0 : i32
    return %c0_i32, %c0_i32_0 : i32, i32
  }
  func.func @transform_1(%arg0: i32, %arg1: i32, %arg2: memref<32xi32, #tpu.memory_space<smem>>) -> (i32, i32) {
    %c0_i32 = arith.constant 0 : i32
    %c0_i32_0 = arith.constant 0 : i32
    return %arg0, %c0_i32 : i32, i32
  }
  func.func @transform_2(%arg0: i32, %arg1: i32, %arg2: memref<32xi32, #tpu.memory_space<smem>>) -> (i32, i32, i32) {
    %c0_i32 = arith.constant 0 : i32
    %c0_i32_0 = arith.constant 0 : i32
    return %arg1, %arg0, %c0_i32 : i32, i32, i32
  }
}

</mosaic_0001>

<bundles_post_ra>
// kernel: tpu_custom_call.1
= control target key start
LH: loop header
LB: loop body
LE: loop exit
PB: predicated region body
PF: predicated region fallthrough
CT: control target
= control target key end

     0   :  { %s912_s0 = inlined_call_operand.hbm [shape: s32[32], index: 0, kind: input, shape index: {}]   ;;  %s913_s1 = inlined_call_operand.hbm [shape: f32[512,128], index: 1, kind: input, shape index: {}]   ;;  %s914_s2 = inlined_call_operand.hbm [shape: f32[16,128], index: 2, kind: input, shape index: {}]   ;;  %s915_s3 = inlined_call_operand.hbm [shape: f32[2,16,128], index: 3, kind: output, shape index: {}]  }
   0x1   :  { %s485_s14 = scalar_lea.hbm %s912_s0, 16 }
   0x2   :  { %p486_p0 = scmp.ne.s32.totalorder %s912_s0, %s485_s14  ;;  %p489_p1 = scmp.lt.u32.totalorder %s485_s14, %s912_s0 }
   0x4   :  { %p491_p2 = pnand %p489_p1, %p486_p0 }
   0x6   :  { %494 = shalt.err (!%p491_p2)  }
   0x7   :  { %s641_s19 = smov [#allocation3]  }
   0x8   :  { %9 = dma.hbm_to_smem %s912_s0, 16, %s641_s19, [#allocation2] }
   0x9   :  { %603 = dma.done.wait [#allocation2], 16 }
   0xa   :  { %604 = vsyncadd [#allocation2], 4294967280 }
   0xb   :  { %11 = sfence }
   0xc   :  { %12 = vsyncpa [#allocation5], 0 }
   0xd   :  { %13 = vsyncpa [#allocation8], 0 }
   0xe   :  { %14 = vsyncpa [#allocation6], 0 }
   0xf   :  { %16 = vsyncpa [#allocation6 + $0x1], 0  ;;  %s681_s22 = smov 0   ;;  %s683_s23 = smov 0  }
  0x10   :  { %s685_s24 = smov 0   ;;  %s687_s25 = smov 0  }
  0x11   :  { %s689_s26 = smov 0   ;;  %s691_s27 = smov 0  }
  0x12 LB: > { %s388_s0 = sadd.s32 4294967295, %s639_s27   ;;  %s389_s28 = sadd.s32 4294967294, %s639_s27   ;;  %s639_s27 = sphi %s691_s27, %s22_s27   ;;  %s635_s26 = sphi %s689_s26, %s933_s26   ;;  %s631_s25 = sphi %s687_s25, %s932_s25   ;;  %s627_s24 = sphi %s685_s24, %s931_s24   ;;  %s623_s23 = sphi %s683_s23, %s930_s23   ;;  %s619_s22 = sphi %s681_s22, %s929_s22  }
  0x13   : > { %s31_s29 = sadd.s32 1, %s635_s26  ;;  %s90_s30 = sadd.s32 1, %s627_s24 }
  0x14   : > { %p32_p3 = scmp.ge.s32.totalorder %s31_s29, 2  ;;  %p100_p4 = scmp.ne.s32.totalorder %s627_s24, %s623_s23 }
  0x15   : > { %p101_p5 = scmp.eq.s32.totalorder %s388_s0, 1  ;;  %p106_p6 = scmp.ne.s32.totalorder %s623_s23, %s619_s22 }
  0x16   : > { %s935_s29 = smov (%p32_p3, %s31_s29), 0  ;;  %p107_p8 = scmp.eq.s32.totalorder %s389_s28, 1 }
  0x17   : > { %p721_p7 = por %p101_p5, %p100_p4  ;;  %s85_s5 = ssub.s32 %s635_s26, %s935_s29 }
  0x18   : > { %p390_p9 = scmp.ge.s32.totalorder %s639_s27, 1  ;;  %p88_p10 = scmp.eq.s32.totalorder %s85_s5, 0 }
  0x19   : > { %s920_s4 = scalar_select %p721_p7, 1, 0 }
  0x1a   : > { %p728_p11 = por %p107_p8, %p106_p6  ;;  %p114_p12 = scmp.lt.s32.totalorder %s639_s27, 3 }
  0x1b   : > { %s734_s7 = scalar_select %p88_p10, %s627_s24, %s90_s30  }
  0x1c   : > { %s921_s6 = scalar_select %p728_p11, 1, 0 }
  0x1d   : > { %p736_p13 = pnand %p390_p9, %p114_p12  ;;  %p740_p0 = scmp.eq.s32.totalorder %s388_s0, 0 }
  0x1e   : > { %s642_s10 = smov [#allocation4]   ;;  %s643_s13 = smov [#allocation7]  }
  0x1f   : > { %s922_s8 = scalar_select %p736_p13, 1, 0 }
  0x20   : > { %s923_s9 = scalar_select %p740_p0, 1, 0 }
  0x21   : > { %p414_p1 = pneg %p736_p13  ;;  %s126_s11 = sshll.u32 %s642_s10, 4  ;;  %s127_s11 = int_to_ptr.vmem [resolvable:$true] %s126_s11 }
  0x22   : > { %s142_s14 = sshll.u32 %s643_s13, 4  ;;  %s495_s17 = scalar_lea.hbm %s913_s1, 8192  ;;  %s752_s14 = int_to_ptr.vmem [resolvable:$true] %s142_s14 }
  0x23   : > { %p748_p2 = pnand %p740_p0, %p414_p1  ;;  %p496_p3 = scmp.ne.s32.totalorder %s913_s1, %s495_s17 }
  0x24   : > { %p502_p8 = scmp.lt.u32.totalorder %s495_s17, %s913_s1 }
  0x25   : > { %p497_p4 = pneg %p748_p2 }
  0x27   : > { %p498_p5 = pnand %p497_p4, %p496_p3 }
  0x29   : > { %p499_p6 = pneg %p498_p5 }
  0x2b   : > { %p504_p9 = pnand %p502_p8, %p499_p6 }
  0x2d   : > { %507 = shalt.err (!%p504_p9)
}
  0x2e   : > { %s508_s0 = scalar_lea.vmem %s127_s11, 8192  ;;  %p516_p11 = scmp.lt.s32.totalorder %s127_s11, %s127_s11 }
  0x2f   : > { %p509_p10 = scmp.ne.s32.totalorder %s127_s11, %s508_s0  ;;  %p517_p7 = scmp.lt.s32.totalorder %s508_s0, %s508_s0 }
  0x31   : > { %p511_p12 = pnand %p509_p10, %p497_p4  ;;  %p518_p0 = por %p517_p7, %p516_p11 }
  0x33   : > { %p512_p1 = pneg %p511_p12 }
  0x35   : > { %p519_p13 = pnand %p518_p0, %p512_p1 }
  0x37   : > { %522 = shalt.err (!%p519_p13)
}
  0x38   : > { %s644_s28 = smov 128   ;;  %s645_s30 = smov 8  }
  0x39   : > { %417 = dma.hbm_to_vmem [thread:$0]  (!%p748_p2), %s913_s1, 8192, %s127_s11, [#allocation5], %s644_s28, %s644_s28, %s645_s30  }
  0x3a   : > { %s523_s16 = scalar_lea.hbm %s914_s2, 256 }
  0x3b   : > { %p524_p3 = scmp.ne.s32.totalorder %s914_s2, %s523_s16  ;;  %p530_p13 = scmp.lt.u32.totalorder %s523_s16, %s914_s2 }
  0x3d   : > { %p526_p7 = pnand %p524_p3, %p497_p4 }
  0x3f   : > { %p527_p11 = pneg %p526_p7 }
  0x41   : > { %p532_p0 = pnand %p530_p13, %p527_p11 }
  0x43   : > { %535 = shalt.err (!%p532_p0)
}
  0x44   : > { %s536_s11 = scalar_lea.vmem %s752_s14, 256  ;;  %p544_p9 = scmp.lt.s32.totalorder %s752_s14, %s752_s14 }
  0x45   : > { %p537_p5 = scmp.ne.s32.totalorder %s752_s14, %s536_s11  ;;  %p545_p10 = scmp.lt.s32.totalorder %s536_s11, %s536_s11 }
  0x47   : > { %p539_p6 = pnand %p537_p5, %p497_p4  ;;  %p546_p12 = por %p545_p10, %p544_p9 }
  0x49   : > { %p540_p8 = pneg %p539_p6 }
  0x4b   : > { %p547_p1 = pnand %p546_p12, %p540_p8 }
  0x4d   : > { %550 = shalt.err (!%p547_p1)
}
  0x4e   : > { %420 = dma.hbm_to_vmem [thread:$0]  (!%p748_p2), %s914_s2, 256, %s752_s14, [#allocation8], %s644_s28, %s644_s28, %s645_s30  }
  0x4f   : > { %p925_p3 = scmp.ne.s32.totalorder %s922_s8, 0 }
  0x50   : > { %p926_p7 = scmp.ne.s32.totalorder (!%p925_p3), %s923_s9, 0 }
  0x51   : > { %158 = sbr.rel (%p925_p3) target bundleno = 147 (0x93), region = 28 }
  0x58   : > { %606 = dma.done.wait (%p926_p7), [#allocation5], 8192  }
  0x59   : > { %608 = vsyncadd (%p926_p7), [#allocation5], 4294959104 }
  0x5a   : > { %610 = dma.done.wait (%p926_p7), [#allocation8], 256  }
  0x5b   : > { %612 = vsyncadd (%p926_p7), [#allocation8], 4294967040  ;;  %s176_s12 = sand.u32 1, %s623_s23   ;;  %s813_s14 = sshll.u32 %s631_s25, 4  ;;  %v265_v11 = vld [vmem:[#allocation7] sm:$0xff]  ;;  %v266_v19 = vld [vmem:[#allocation7 + $0x8] sm:$0xff] }
  0x5c   : > { %s396_s8 = sshll.u32 %s176_s12, 4  ;;  %s184_s28 = sld [smem:[#allocation3 + %s813_s14]] }
  0x5d   : > { %s188_s30 = sadd.s32 1, %s813_s14  ;;  %s193_s5 = sadd.s32 2, %s813_s14 }
  0x5e   : > { %s189_s9 = sld [smem:[#allocation3 + %s188_s30]]  ;;  %s198_s13 = sadd.s32 3, %s813_s14 }
  0x5f   : > { %s194_s10 = sld [smem:[#allocation3 + %s193_s5]]  ;;  %s203_s16 = sadd.s32 4, %s813_s14 }
  0x60   : > { %s199_s15 = sld [smem:[#allocation3 + %s198_s13]]  ;;  %s208_s18 = sadd.s32 5, %s813_s14 }
  0x61   : > { %s204_s17 = sld [smem:[#allocation3 + %s203_s16]]  ;;  %s213_s11 = sadd.s32 6, %s813_s14 }
  0x62   : > { %s209_s19 = sld [smem:[#allocation3 + %s208_s18]]  ;;  %s185_s20 = scalar_lea.vmem [#allocation4], %s184_s28 }
  0x63   : > { %v186_v0 = vld [vmem:[%s185_s20] sm:$0x1]  ;;  %s218_s21 = sadd.s32 7, %s813_s14  ;;  %s825_s0 = scalar_lea.vmem [#allocation9], %s396_s8 }
  0x64   : > { %187 = vst [vmem:[%s825_s0] sm:$0x1] %v186_v0  ;;  %s214_s30 = sld [smem:[#allocation3 + %s213_s11]]  ;;  %s190_s5 = scalar_lea.vmem [#allocation4], %s189_s9 }
  0x65   : > { %v191_v1 = vld [vmem:[%s190_s5] sm:$0x1]  ;;  %s219_s13 = sld [smem:[#allocation3 + %s218_s21]]  ;;  %s195_s16 = scalar_lea.vmem [#allocation4], %s194_s10 }
  0x66   : > { %192 = vst [vmem:[%s825_s0 + $0x1] sm:$0x1] %v191_v1  ;;  %v196_v2 = vld [vmem:[%s195_s16] sm:$0x1]  ;;  %s223_s28 = sadd.s32 8, %s813_s14  ;;  %s200_s8 = scalar_lea.vmem [#allocation4], %s199_s15 }
  0x67   : > { %197 = vst [vmem:[%s825_s0 + $0x2] sm:$0x1] %v196_v2  ;;  %v201_v3 = vld [vmem:[%s200_s8] sm:$0x1]  ;;  %s224_s18 = sld [smem:[#allocation3 + %s223_s28]]  ;;  %s205_s20 = scalar_lea.vmem [#allocation4], %s204_s17 }
  0x68   : > { %202 = vst [vmem:[%s825_s0 + $0x3] sm:$0x1] %v201_v3  ;;  %v206_v4 = vld [vmem:[%s205_s20] sm:$0x1]  ;;  %s228_s11 = sadd.s32 9, %s813_s14  ;;  %s210_s9 = scalar_lea.vmem [#allocation4], %s209_s19 }
  0x69   : > { %207 = vst [vmem:[%s825_s0 + $0x4] sm:$0x1] %v206_v4  ;;  %v211_v5 = vld [vmem:[%s210_s9] sm:$0x1]  ;;  %s229_s21 = sld [smem:[#allocation3 + %s228_s11]]  ;;  %s233_s10 = sadd.s32 10, %s813_s14 }
  0x6a   : > { %212 = vst [vmem:[%s825_s0 + $0x5] sm:$0x1] %v211_v5  ;;  %s234_s15 = sld [smem:[#allocation3 + %s233_s10]]  ;;  %s215_s5 = scalar_lea.vmem [#allocation4], %s214_s30 }
  0x6b   : > { %v216_v6 = vld [vmem:[%s215_s5] sm:$0x1]  ;;  %s238_s16 = sadd.s32 11, %s813_s14  ;;  %s220_s17 = scalar_lea.vmem [#allocation4], %s219_s13 }
  0x6c   : > { %217 = vst [vmem:[%s825_s0 + $0x6] sm:$0x1] %v216_v6  ;;  %v221_v7 = vld [vmem:[%s220_s17] sm:$0x1]  ;;  %s239_s28 = sld [smem:[#allocation3 + %s238_s16]]  ;;  %s243_s8 = sadd.s32 12, %s813_s14 }
  0x6d   : > { %222 = vst [vmem:[%s825_s0 + $0x7] sm:$0x1] %v221_v7  ;;  %s244_s19 = sld [smem:[#allocation3 + %s243_s8]]  ;;  %s225_s20 = scalar_lea.vmem [#allocation4], %s224_s18 }
  0x6e   : > { %v226_v8 = vld [vmem:[%s225_s20] sm:$0x1]  ;;  %s248_s11 = sadd.s32 13, %s813_s14  ;;  %s253_s9 = sadd.s32 14, %s813_s14 }
  0x6f   : > { %227 = vst [vmem:[%s825_s0 + $0x8] sm:$0x1] %v226_v8  ;;  %s249_s30 = sld [smem:[#allocation3 + %s248_s11]]  ;;  %s230_s10 = scalar_lea.vmem [#allocation4], %s229_s21 }
  0x70   : > { %v231_v9 = vld [vmem:[%s230_s10] sm:$0x1]  ;;  %s254_s5 = sld [smem:[#allocation3 + %s253_s9]]  ;;  %s235_s13 = scalar_lea.vmem [#allocation4], %s234_s15 }
  0x71   : > { %232 = vst [vmem:[%s825_s0 + $0x9] sm:$0x1] %v231_v9  ;;  %v236_v10 = vld [vmem:[%s235_s13] sm:$0x1]  ;;  %s258_s16 = sadd.s32 15, %s813_s14  ;;  %s403_s8 = sshll.u32 %s631_s25, 8 }
  0x72   : > { %237 = vst [vmem:[%s825_s0 + $0xa] sm:$0x1] %v236_v10  ;;  %s259_s18 = sld [smem:[#allocation3 + %s258_s16]]  ;;  %s240_s17 = scalar_lea.vmem [#allocation4], %s239_s28 }
  0x73   : > { %v241_v12 = vld [vmem:[%s240_s17] sm:$0x1]  ;;  %s245_s21 = scalar_lea.vmem [#allocation4], %s244_s19  ;;  %s287_s20 = sshll.u32 %s825_s0, 4  ;;  %s861_s20 = int_to_ptr.vmem [resolvable:$true] %s287_s20 }
  0x74   : > { %v263_v13 = vld [vmem:[%s825_s0] sm:$0xff]  ;;  %242 = vst [vmem:[%s825_s0 + $0xb] sm:$0x1] %v241_v12  ;;  %s859_s9 = scalar_lea.hbm %s915_s3, %s403_s8  ;;  %s551_s10 = scalar_lea.vmem %s861_s20, 256 }
  0x75   : > { %v246_v14 = vld [vmem:[%s245_s21] sm:$0x1]  ;;  %v267_v15 = vadd.f32 %v265_v11, %v263_v13  ;;  %s250_s15 = scalar_lea.vmem [#allocation4], %s249_s30  ;;  %s866_s30 = scalar_lea.sflag [#allocation6], %s176_s12 }
  0x76   : > { %247 = vst [vmem:[%s825_s0 + $0xc] sm:$0x1] %v246_v14  ;;  %v251_v16 = vld [vmem:[%s250_s15] sm:$0x1]  ;;  %s255_s14 = scalar_lea.vmem [#allocation4], %s254_s5  ;;  %p552_p2 = scmp.ne.s32.totalorder %s861_s20, %s551_s10 }
  0x77   : > { %269 = vst [vmem:[%s825_s0] sm:$0xff] %v267_v15  ;;  %252 = vst [vmem:[%s825_s0 + $0xd] sm:$0x1] %v251_v16  ;;  %v256_v17 = vld [vmem:[%s255_s14] sm:$0x1]  ;;  %p927_p4 = scmp.ne.s32.totalorder %s920_s4, 0  ;;  %s646_s25 = smov [#allocation9]  }
  0x78   : > { %257 = vst [vmem:[%s825_s0 + $0xe] sm:$0x1] %v256_v17  ;;  %s260_s28 = scalar_lea.vmem [#allocation4], %s259_s18  ;;  %s555_s5 = sshll.u32 %s646_s25, 4  ;;  %s556_s5 = int_to_ptr.vmem [resolvable:$false] %s555_s5 }
  0x79   : > { %v261_v18 = vld [vmem:[%s260_s28] sm:$0x1]  ;;  %p553_p11 = pnand %p552_p2, %p927_p4  ;;  %s557_s13 = scalar_lea.vmem %s556_s5, 512 }
  0x7a   : > { %262 = vst [vmem:[%s825_s0 + $0xf] sm:$0x1] %v261_v18  ;;  %p558_p0 = scmp.lt.s32.totalorder %s861_s20, %s556_s5  ;;  %p559_p5 = scmp.lt.s32.totalorder %s557_s13, %s551_s10 }
  0x7b   : > { %p554_p13 = pneg %p553_p11 }
  0x7c   : > { %p560_p6 = por %p559_p5, %p558_p0 }
  0x7e   : > { %p561_p8 = pnand %p560_p6, %p554_p13 }
  0x81   : > { %v264_v20 = vld [vmem:[%s825_s0 + $0x8] sm:$0xff] }
  0x82   : > { %v268_v21 = vadd.f32 %v266_v19, %v264_v20 }
  0x84   : > { %270 = vst [vmem:[%s825_s0 + $0x8] sm:$0xff] %v268_v21 }
  0x85   : > { %564 = shalt.err (!%p561_p8)
}
  0x86   : > { %s565_s12 = scalar_lea.hbm %s859_s9, 256  ;;  %s569_s18 = scalar_lea.hbm %s915_s3, 512 }
  0x87   : > { %p566_p9 = scmp.ne.s32.totalorder %s859_s9, %s565_s12  ;;  %p570_p1 = scmp.lt.u32.totalorder %s859_s9, %s915_s3 }
  0x88   : > { %p571_p3 = scmp.lt.u32.totalorder %s569_s18, %s565_s12  ;;  %p573_p2 = scmp.lt.u32.totalorder %s565_s12, %s859_s9 }
  0x89   : > { %p567_p10 = pnand %p566_p9, %p927_p4 }
  0x8a   : > { %p572_p7 = por %p571_p3, %p570_p1 }
  0x8b   : > { %p568_p12 = pneg %p567_p10 }
  0x8c   : > { %p574_p11 = por %p573_p2, %p572_p7 }
  0x8e   : > { %p575_p13 = pnand %p574_p11, %p568_p12 }
  0x90   : > { %578 = shalt.err (!%p575_p13)
}
  0x91   : > { %s647_s15 = smov 128   ;;  %s648_s14 = smov 8  }
  0x92   : > { %412 = dma.vmem_to_hbm [thread:$0]  (%p927_p4), %s861_s20, 256, %s859_s9, %s866_s30, %s647_s15, %s647_s15, %s648_s14  }
  0x93 PF: > { %p429_p0 = scmp.ge.s32.totalorder %s639_s27, 2  ;;  %s302_s28 = sand.u32 1, %s619_s22  }
  0x94   : > { %p928_p5 = scmp.ne.s32.totalorder %s921_s6, 0  ;;  %s303_s8 = scalar_lea.sflag [#allocation6], %s302_s28 }
  0x96   : > { %p422_p6 = pnand %p429_p0, %p928_p5 }
  0x98   : > { %614 = dma.done.wait (!%p422_p6), %s303_s8, 256  }
  0x99   : > { %616 = vsyncadd (!%p422_p6), %s303_s8, 4294967040  ;;  %s22_s27 = sadd.s32 1, %s639_s27   ;;  %s929_s22 = smov %s623_s23 }
  0x9a   : > { %p19_p8 = scmp.ge.s32.totalorder %s22_s27, 4   ;;  %s930_s23 = smov %s627_s24 }
  0x9b   : > { %s931_s24 = smov %s734_s7  ;;  %s932_s25 = smov %s635_s26 }
  0x9c   : > { %s933_s26 = smov %s935_s29  ;;  %21 = sbr.rel (!%p19_p8) target bundleno = 18 (0x12), region = 86 }
  0xa3   :  { %308 = vsyncpa [#allocation5], 1 }
  0xa4   :  { %310 = vsyncpa [#allocation5 + $0x1], 1 }
  0xa5   :  { %311 = vsyncpa [#allocation8], 1 }
  0xa6   :  { %312 = vsyncpa [#allocation6], 1 }
  0xa7   :  { %314 = vsyncpa [#allocation6 + $0x1], 1 }

</bundles_post_ra>
